<compile_context>
chip_gen: v5e
topology: v5e:2x2
jax: 0.10.0
libtpu: 0.0.40
codegen_flags: <defaults>
</compile_context>

<pallas_src>
import math

import jax
import jax.numpy as jnp
from jax.experimental import pallas as pl
from jax.experimental.pallas import tpu as pltpu


def _channel_attention_kernel(x_ref, pool_ref, bcast_ref,
                              w1_ref, b1_ref, w2_ref, b2_ref, o_ref):
    # x_ref block: (bt*c, n_pad) -- lane-dense flattened (series, modal) axis.
    xb = x_ref[...]                                    # native dtype, no full-tile upcast

    # Mean over series via an exact 0/1 selection matmul (1/series folded into pool).
    pooled = jnp.dot(xb, pool_ref[...], preferred_element_type=jnp.float32)   # (bt*c, md)

    # Two-layer channel MLP; weights are block-diagonal over the bt batch
    # elements of this block, so plain 2-D dots cover the whole block.
    h = jnp.dot(w1_ref[...], pooled, preferred_element_type=jnp.float32) + b1_ref[...]
    h = jnp.maximum(h, 0.0)
    att = jnp.dot(w2_ref[...], h, preferred_element_type=jnp.float32) + b2_ref[...]
    att = jax.nn.sigmoid(att)                                                  # (bt*c, md)

    # Broadcast attention back over series with the transposed 0/1 selection
    # matrix (exact: each output lane picks exactly one att entry).
    att_flat = jnp.dot(att.astype(xb.dtype), bcast_ref[...],
                       preferred_element_type=jnp.float32).astype(xb.dtype)    # (bt*c, n_pad)

    o_ref[...] = (xb * att_flat).astype(o_ref.dtype)


def _choose_batch_tile(b, c, n_pad, itemsize):
    """How many batch elements share one grid step (one x/out block).

    Constraints / preferences (perf review):
      * (bt*c) % 8 == 0 via bt multiple of 8/gcd(c,8)  (no whole-array fallback).
      * bt*c <= 256: keep the kron'ed MLP weights within ~one MXU tile; get
        batch coverage from the grid, not from bt.
      * block bytes <= ~4 MiB (amortizes per-grid-step pipeline overhead while
        staying well inside scoped VMEM once double-buffered in+out).
      * prefer an even grid of >= 2 steps so both v7x TensorCores stay busy.
    """
    req = 8 // math.gcd(c, 8)                      # bt multiple of this => (bt*c) % 8 == 0
    kron_cap = max(req, 256 // c)                  # one-MXU-tile cap on the kron
    per_batch = max(c * n_pad * itemsize, 1)
    byte_cap = max(req, (4 * 1024 * 1024) // per_batch)
    cap = max(1, min(b, kron_cap, byte_cap))

    divisors = [t for t in range(1, b + 1) if b % t == 0]
    aligned = [t for t in divisors if t % req == 0]
    ok = [t for t in aligned if t <= cap]
    if not ok:
        ok = [min(aligned)] if aligned else []     # exceed caps before going unaligned
    if not ok:
        return b                                   # last resort: one whole-array block
    bt = max(ok)
    # Prefer an even grid (>= 2 steps) when blocks stay at least half-size or >= 256 KiB.
    if (b // bt) % 2 == 1:
        even = [t for t in ok if (b // t) % 2 == 0]
        if even:
            bt_even = max(even)
            if 2 * bt_even >= bt or bt_even * per_batch >= 256 * 1024:
                bt = bt_even
    return bt


def channel_attention(x, w1, b1, w2, b2):
    """x: [b, c, series, modal]; w1: [c//4, c]; b1: [c//4]; w2: [c, c//4]; b2: [c]."""
    b, c, s, md = x.shape
    c4 = w1.shape[0]
    n = s * md
    n_pad = n if n % 128 == 0 else ((n + 127) // 128) * 128

    # Lane-dense layout: fold batch into sublanes, (series, modal) into lanes.
    x2 = x.reshape(b * c, n)
    if n_pad != n:
        x2 = jnp.pad(x2, ((0, 0), (0, n_pad - n)))

    bt = _choose_batch_tile(b, c, n_pad, x.dtype.itemsize)
    rows = bt * c
    grid = (b // bt,)

    # Exact 0/1 selection matrices: pool over series (with 1/s folded in) and
    # broadcast attention back over series.  Padded lanes select nothing.
    lane = jnp.arange(n_pad)
    sel = (jnp.arange(md)[:, None] == (lane % md)[None, :]) & (lane < n)[None, :]
    bcast = sel.astype(x.dtype)                                        # (md, n_pad)
    pool = sel.T.astype(x.dtype) * jnp.asarray(1.0 / s, x.dtype)       # (n_pad, md)

    # Block-diagonal MLP weights: one 2-D matmul covers all bt batch elements.
    eye = jnp.eye(bt, dtype=jnp.float32)
    w1_blk = jnp.kron(eye, w1.astype(jnp.float32))                     # (bt*c4, bt*c)
    w2_blk = jnp.kron(eye, w2.astype(jnp.float32))                     # (bt*c, bt*c4)
    b1_blk = jnp.tile(b1.astype(jnp.float32), bt).reshape(bt * c4, 1)
    b2_blk = jnp.tile(b2.astype(jnp.float32), bt).reshape(bt * c, 1)

    # Grid-invariant operands live once in VMEM (no per-step DMA / double buffer).
    resident = pl.BlockSpec(memory_space=pltpu.MemorySpace.VMEM)

    out2 = pl.pallas_call(
        _channel_attention_kernel,
        out_shape=jax.ShapeDtypeStruct((b * c, n_pad), x.dtype),
        grid_spec=pltpu.PrefetchScalarGridSpec(
            num_scalar_prefetch=0,
            grid=grid,
            in_specs=[
                pl.BlockSpec((rows, n_pad), lambda i: (i, 0)),   # x (streamed)
                resident,                                        # pool matrix
                resident,                                        # broadcast matrix
                resident,                                        # W1 (block-diag)
                resident,                                        # b1
                resident,                                        # W2 (block-diag)
                resident,                                        # b2
            ],
            out_specs=pl.BlockSpec((rows, n_pad), lambda i: (i, 0)),
        ),
        compiler_params=pltpu.CompilerParams(
            dimension_semantics=("parallel",),
            vmem_limit_bytes=48 * 1024 * 1024,
        ),
    )(x2, pool, bcast, w1_blk, b1_blk, w2_blk, b2_blk)

    if n_pad != n:
        out2 = out2[:, :n]
    return out2.reshape(b, c, s, md)


def channel_attention_ref(x, w1, b1, w2, b2):
    # Pure-JAX reference mirroring the PyTorch forward exactly.
    pooled = jnp.mean(x, axis=2, keepdims=True)            # [b, c, 1, m]
    att = jnp.transpose(pooled, (0, 3, 1, 2))[..., 0]      # [b, m, c]
    att = jnp.maximum(att @ w1.T + b1, 0.0)                # [b, m, c//4]
    att = jax.nn.sigmoid(att @ w2.T + b2)                  # [b, m, c]
    att = jnp.transpose(att, (0, 2, 1))[:, :, None, :]     # [b, c, 1, m]
    return x * att


if __name__ == "__main__":
    B, C, S, M = 2, 8, 16, 16   # [b, c, series, modal]; C // 4 == 2
    key = jax.random.PRNGKey(0)
    kx, kw1, kb1, kw2, kb2 = jax.random.split(key, 5)

    x = jax.random.normal(kx, (B, C, S, M), dtype=jnp.float32)
    # Deterministic synthetic parameters (PyTorch Linear layout: [out, in]).
    w1 = jax.random.normal(kw1, (C // 4, C), dtype=jnp.float32) * 0.2
    b1 = jax.random.normal(kb1, (C // 4,), dtype=jnp.float32) * 0.1
    w2 = jax.random.normal(kw2, (C, C // 4), dtype=jnp.float32) * 0.2
    b2 = jax.random.normal(kb2, (C,), dtype=jnp.float32) * 0.1

    out = channel_attention(x, w1, b1, w2, b2)
    out = jax.block_until_ready(out)

    ref = channel_attention_ref(x, w1, b1, w2, b2)
    assert out.shape == (B, C, S, M)
    assert jnp.allclose(out, ref, atol=1e-5, rtol=1e-5), float(jnp.max(jnp.abs(out - ref)))

    print("KERNEL_OK")
</pallas_src>

<mosaic_0001>
module attributes {stable_mosaic.version = 11 : i64} {
  func.func @_channel_attention_kernel(%arg0: i32, %arg1: memref<8x256xf32, #tpu.memory_space<vmem>>, %arg2: memref<256x16xf32, #tpu.memory_space<vmem>>, %arg3: memref<16x256xf32, #tpu.memory_space<vmem>>, %arg4: memref<2x8xf32, #tpu.memory_space<vmem>>, %arg5: memref<2x1xf32, #tpu.memory_space<vmem>>, %arg6: memref<8x2xf32, #tpu.memory_space<vmem>>, %arg7: memref<8x1xf32, #tpu.memory_space<vmem>>, %arg8: memref<8x256xf32, #tpu.memory_space<vmem>>) attributes {dimension_semantics = [#tpu.dimension_semantics<parallel>], iteration_bounds = array<i64: 2>, scalar_prefetch = 0 : i64, scratch_operands = 0 : i64, tpu.core_type = #tpu.core_type<tc>, window_params = [{transform_indices = @transform_0, window_bounds = array<i64: 8, 256>}, {pipeline_mode = #tpu.pipeline_mode<synchronous>, transform_indices = @transform_1, window_bounds = array<i64: 256, 16>}, {pipeline_mode = #tpu.pipeline_mode<synchronous>, transform_indices = @transform_2, window_bounds = array<i64: 16, 256>}, {pipeline_mode = #tpu.pipeline_mode<synchronous>, transform_indices = @transform_3, window_bounds = array<i64: 2, 8>}, {pipeline_mode = #tpu.pipeline_mode<synchronous>, transform_indices = @transform_4, window_bounds = array<i64: 2, 1>}, {pipeline_mode = #tpu.pipeline_mode<synchronous>, transform_indices = @transform_5, window_bounds = array<i64: 8, 2>}, {pipeline_mode = #tpu.pipeline_mode<synchronous>, transform_indices = @transform_6, window_bounds = array<i64: 8, 1>}, {transform_indices = @transform_7, window_bounds = array<i64: 8, 256>}]} {
    %c0 = arith.constant 0 : index
    %c0_0 = arith.constant 0 : index
    %0 = vector.load %arg1[%c0, %c0_0] : memref<8x256xf32, #tpu.memory_space<vmem>>, vector<8x256xf32>
    %c0_1 = arith.constant 0 : index
    %c0_2 = arith.constant 0 : index
    %1 = vector.load %arg2[%c0_1, %c0_2] : memref<256x16xf32, #tpu.memory_space<vmem>>, vector<256x16xf32>
    %cst = arith.constant dense<0.000000e+00> : vector<8x16xf32>
    %2 = tpu.matmul %0, %1, %cst {dimension_numbers = #tpu.dot_dimension_numbers<[1], [0], [0], [1], [0, 0, 1, 1], [], []>} : vector<8x256xf32>, vector<256x16xf32>, vector<8x16xf32> -> vector<8x16xf32>
    %c0_3 = arith.constant 0 : index
    %c0_4 = arith.constant 0 : index
    %3 = vector.load %arg4[%c0_3, %c0_4] : memref<2x8xf32, #tpu.memory_space<vmem>>, vector<2x8xf32>
    %cst_5 = arith.constant dense<0.000000e+00> : vector<2x16xf32>
    %4 = tpu.matmul %3, %2, %cst_5 {dimension_numbers = #tpu.dot_dimension_numbers<[1], [0], [0], [1], [0, 0, 1, 1], [], []>} : vector<2x8xf32>, vector<8x16xf32>, vector<2x16xf32> -> vector<2x16xf32>
    %c0_6 = arith.constant 0 : index
    %c0_7 = arith.constant 0 : index
    %5 = vector.load %arg5[%c0_6, %c0_7] : memref<2x1xf32, #tpu.memory_space<vmem>>, vector<2x1xf32>
    %6 = vector.broadcast %5 : vector<2x1xf32> to vector<2x16xf32>
    %7 = arith.addf %4, %6 : vector<2x16xf32>
    %cst_8 = arith.constant 0.000000e+00 : f32
    %8 = vector.broadcast %cst_8 : f32 to vector<2x16xf32>
    %9 = arith.maximumf %7, %8 : vector<2x16xf32>
    %c0_9 = arith.constant 0 : index
    %c0_10 = arith.constant 0 : index
    %10 = vector.load %arg6[%c0_9, %c0_10] : memref<8x2xf32, #tpu.memory_space<vmem>>, vector<8x2xf32>
    %cst_11 = arith.constant dense<0.000000e+00> : vector<8x16xf32>
    %11 = tpu.matmul %10, %9, %cst_11 {dimension_numbers = #tpu.dot_dimension_numbers<[1], [0], [0], [1], [0, 0, 1, 1], [], []>} : vector<8x2xf32>, vector<2x16xf32>, vector<8x16xf32> -> vector<8x16xf32>
    %c0_12 = arith.constant 0 : index
    %c0_13 = arith.constant 0 : index
    %12 = vector.load %arg7[%c0_12, %c0_13] : memref<8x1xf32, #tpu.memory_space<vmem>>, vector<8x1xf32>
    %13 = vector.broadcast %12 : vector<8x1xf32> to vector<8x16xf32>
    %14 = arith.addf %11, %13 : vector<8x16xf32>
    %15 = arith.negf %14 : vector<8x16xf32>
    %16 = math.exp %15 : vector<8x16xf32>
    %cst_14 = arith.constant 1.000000e+00 : f32
    %17 = vector.broadcast %cst_14 : f32 to vector<8x16xf32>
    %18 = arith.addf %17, %16 : vector<8x16xf32>
    %19 = arith.divf %17, %18 : vector<8x16xf32>
    %c0_15 = arith.constant 0 : index
    %c0_16 = arith.constant 0 : index
    %20 = vector.load %arg3[%c0_15, %c0_16] : memref<16x256xf32, #tpu.memory_space<vmem>>, vector<16x256xf32>
    %cst_17 = arith.constant dense<0.000000e+00> : vector<8x256xf32>
    %21 = tpu.matmul %19, %20, %cst_17 {dimension_numbers = #tpu.dot_dimension_numbers<[1], [0], [0], [1], [0, 0, 1, 1], [], []>} : vector<8x16xf32>, vector<16x256xf32>, vector<8x256xf32> -> vector<8x256xf32>
    %22 = arith.mulf %0, %21 : vector<8x256xf32>
    %c0_18 = arith.constant 0 : index
    %c0_19 = arith.constant 0 : index
    %23 = vector.load %arg8[%c0_18, %c0_19] : memref<8x256xf32, #tpu.memory_space<vmem>>, vector<8x256xf32>
    tpu.vector_store %arg8[%c0_18, %c0_19], %22 {strides = array<i32>} : memref<8x256xf32, #tpu.memory_space<vmem>>, vector<8x256xf32>,
    return
  }
  func.func @transform_0(%arg0: i32) -> (i32, i32) {
    %c0_i32 = arith.constant 0 : i32
    %c0_i32_0 = arith.constant 0 : i32
    return %arg0, %c0_i32 : i32, i32
  }
  func.func @transform_1(%arg0: i32) -> (i32, i32) {
    %c0_i32 = arith.constant 0 : i32
    %c0_i32_0 = arith.constant 0 : i32
    %c0_i32_1 = arith.constant 0 : i32
    return %c0_i32, %c0_i32_0 : i32, i32
  }
  func.func @transform_2(%arg0: i32) -> (i32, i32) {
    %c0_i32 = arith.constant 0 : i32
    %c0_i32_0 = arith.constant 0 : i32
    %c0_i32_1 = arith.constant 0 : i32
    return %c0_i32, %c0_i32_0 : i32, i32
  }
  func.func @transform_3(%arg0: i32) -> (i32, i32) {
    %c0_i32 = arith.constant 0 : i32
    %c0_i32_0 = arith.constant 0 : i32
    %c0_i32_1 = arith.constant 0 : i32
    return %c0_i32, %c0_i32_0 : i32, i32
  }
  func.func @transform_4(%arg0: i32) -> (i32, i32) {
    %c0_i32 = arith.constant 0 : i32
    %c0_i32_0 = arith.constant 0 : i32
    %c0_i32_1 = arith.constant 0 : i32
    return %c0_i32, %c0_i32_0 : i32, i32
  }
  func.func @transform_5(%arg0: i32) -> (i32, i32) {
    %c0_i32 = arith.constant 0 : i32
    %c0_i32_0 = arith.constant 0 : i32
    %c0_i32_1 = arith.constant 0 : i32
    return %c0_i32, %c0_i32_0 : i32, i32
  }
  func.func @transform_6(%arg0: i32) -> (i32, i32) {
    %c0_i32 = arith.constant 0 : i32
    %c0_i32_0 = arith.constant 0 : i32
    %c0_i32_1 = arith.constant 0 : i32
    return %c0_i32, %c0_i32_0 : i32, i32
  }
  func.func @transform_7(%arg0: i32) -> (i32, i32) {
    %c0_i32 = arith.constant 0 : i32
    %c0_i32_0 = arith.constant 0 : i32
    return %arg0, %c0_i32 : i32, i32
  }
}

</mosaic_0001>

<bundles_post_ra>
// kernel: tpu_custom_call.1
= control target key start
LH: loop header
LB: loop body
LE: loop exit
PB: predicated region body
PF: predicated region fallthrough
CT: control target
= control target key end

     0   :  { %12 = vsyncpa [#allocation3], 0  ;;  %s948_s0 = inlined_call_operand.vmem [shape: f32[16,256], index: 0, kind: input, shape index: {}]   ;;  %s949_s1 = inlined_call_operand.vmem [shape: f32[256,16], index: 1, kind: input, shape index: {}]   ;;  %s950_s2 = inlined_call_operand.vmem [shape: f32[16,256], index: 2, kind: input, shape index: {}]   ;;  %s951_s3 = inlined_call_operand.vmem [shape: f32[2,8], index: 3, kind: input, shape index: {}]   ;;  %s952_s4 = inlined_call_operand.vmem [shape: f32[2,1], index: 4, kind: input, shape index: {}]   ;;  %s953_s5 = inlined_call_operand.vmem [shape: f32[8,2], index: 5, kind: input, shape index: {}]   ;;  %s954_s6 = inlined_call_operand.vmem [shape: f32[8,1], index: 6, kind: input, shape index: {}]   ;;  %s955_s7 = inlined_call_operand.hbm [shape: f32[16,256], index: 7, kind: output, shape index: {}]  }
   0x1   :  { %14 = vsyncpa [#allocation3 + $0x1], 0  ;;  %s735_s24 = smov 0   ;;  %s737_s25 = smov 0  }
   0x2   :  { %s739_s26 = smov 0   ;;  %s741_s27 = smov 0  }
   0x3 LB: > { %s756_s28 = sadd.s32 4294967295, %s692_s27   ;;  %s565_s29 = sadd.s32 4294967294, %s692_s27   ;;  %s692_s27 = sphi %s741_s27, %s961_s27   ;;  %s688_s26 = sphi %s739_s26, %s960_s26   ;;  %s684_s25 = sphi %s737_s25, %s959_s25   ;;  %s680_s24 = sphi %s735_s24, %s958_s24  }
   0x4   : > { %s760_s30 = sadd.s32 1, %s692_s27   ;;  %s179_s8 = sadd.s32 1, %s688_s26 }
   0x5   : > { %s176_s9 = ssub.s32 %s692_s27, %s760_s30  ;;  %p189_p0 = scmp.ne.s32.totalorder %s688_s26, %s684_s25 }
   0x6   : > { %p177_p1 = scmp.eq.s32.totalorder %s176_s9, 0  ;;  %p190_p2 = scmp.eq.s32.totalorder %s756_s28, 1 }
   0x7   : > { %p195_p3 = scmp.ne.s32.totalorder %s684_s25, %s680_s24  ;;  %p196_p4 = scmp.eq.s32.totalorder %s565_s29, 1 }
   0x8   : > { %s771_s10 = scalar_select %p177_p1, %s688_s26, %s179_s8  }
   0x9   : > { %p773_p5 = por %p190_p2, %p189_p0  ;;  %p777_p6 = por %p196_p4, %p195_p3 }
   0xa   : > { %p568_p7 = scmp.ge.s32.totalorder %s692_s27, 1  ;;  %p240_p8 = scmp.lt.s32.totalorder %s692_s27, 3 }
   0xc   : > { %p241_p9 = pnand %p568_p7, %p240_p8 }
   0xd   : > { %p272_p10 = scmp.lt.s32.totalorder (!%p241_p9), %s756_s28, 1  ;;  %s269_s14 = sand.u32 (!%p241_p9), 1, %s684_s25  }
   0xe   : > { %244 = sbr.rel (%p241_p9) target bundleno = 618 (0x26a), region = 48  ;;  %s569_s16 = sshll.u32 (!%p241_p9), %s269_s14, 4 }
   0xf   : > { %s584_s17 = sshll.u32 (!%p241_p9), %s756_s28, 4  ;;  %s490_s23 = scalar_lea.sflag (!%p241_p9), [#allocation3], %s269_s14 }
  0x10   : > { %s501_s20 = scalar_lea.hbm (!%p241_p9), %s955_s7, %s584_s17  ;;  %s650_s13 = scalar_lea.hbm (!%p241_p9), %s955_s7, 32 }
  0x11   : > { %s505_s22 = sshll.u32 (!%p241_p9), %s501_s20, 4  ;;  %s506_s22 = int_to_ptr.hbm [resolvable:$true] %s505_s22 }
  0x13   : > { %v294_v0 = vld [vmem:[%s949_s1 + $0x78] sm:$0xff]  ;;  %v293_v2 = vld [vmem:[%s949_s1 + $0x70] sm:$0xff]  ;;  %v292_v4 = vld [vmem:[%s949_s1 + $0x68] sm:$0xff]  ;;  %s273_s15 = scalar_select %p272_p10, %s756_s28, 1  ;;  %v694_v35 = vmov 0   ;;  %vm358_vm0 = vcmask 64512  }
  0x14   : > { %v310_v1 = vld [vmem:[%s949_s1 + $0xf8] sm:$0xff]  ;;  %311 = vmatpush.msra.mxu0 %v294_v0  ;;  %v309_v3 = vld [vmem:[%s949_s1 + $0xf0] sm:$0xff]  ;;  %v308_v5 = vld [vmem:[%s949_s1 + $0xe8] sm:$0xff]  ;;  %625 = vset.pattern.permute.xlu0 %v694_v35  ;;  %vm394_vm1 = vcmask 1041408   ;;  %vm390_vm2 = vcmask 15360   ;;  %vm441_vm6 = vcmask 130048  }
  0x15   : > { %331 = vmatpush.msra.mxu1 %v310_v1  ;;  %v291_v6 = vld [vmem:[%s949_s1 + $0x60] sm:$0xff]  ;;  %v290_v8 = vld [vmem:[%s949_s1 + $0x58] sm:$0xff]  ;;  %v289_v10 = vld [vmem:[%s949_s1 + $0x50] sm:$0xff]  ;;  %s583_s29 = sshll.u32 %s273_s15, 4  ;;  %s271_s15 = scalar_lea.vmem [#allocation2], %s569_s16 }
  0x16   : > { %312 = vmatpush.msra.mxu0 %v293_v2  ;;  %v307_v7 = vld [vmem:[%s949_s1 + $0xe0] sm:$0xff]  ;;  %v306_v9 = vld [vmem:[%s949_s1 + $0xd8] sm:$0xff]  ;;  %v305_v11 = vld [vmem:[%s949_s1 + $0xd0] sm:$0xff]  ;;  %s276_s21 = scalar_lea.vmem %s948_s0, %s583_s29  ;;  %s644_s28 = sshra.s32 %s506_s22, 4  ;;  %s645_s28 = int_to_ptr.hbm [resolvable:$true] %s644_s28 }
  0x17   : > { %332 = vmatpush.msra.mxu1 %v309_v3  ;;  %v288_v12 = vld [vmem:[%s949_s1 + $0x48] sm:$0xff]  ;;  %v287_v14 = vld [vmem:[%s949_s1 + $0x40] sm:$0xff]  ;;  %v286_v16 = vld [vmem:[%s949_s1 + $0x38] sm:$0xff]  ;;  %s646_s8 = scalar_lea.hbm %s645_s28, 16  ;;  %p651_p0 = scmp.lt.s32.totalorder %s645_s28, %s955_s7 }
  0x18   : > { %313 = vmatpush.msra.mxu0 %v292_v4  ;;  %v304_v13 = vld [vmem:[%s949_s1 + $0xc8] sm:$0xff]  ;;  %v303_v15 = vld [vmem:[%s949_s1 + $0xc0] sm:$0xff]  ;;  %v302_v17 = vld [vmem:[%s949_s1 + $0xb8] sm:$0xff]  ;;  %p647_p11 = scmp.ne.s32.totalorder %s645_s28, %s646_s8  ;;  %p652_p1 = scmp.lt.s32.totalorder %s650_s13, %s646_s8 }
  0x19   : > { %333 = vmatpush.msra.mxu1 %v308_v5  ;;  %v285_v18 = vld [vmem:[%s949_s1 + $0x30] sm:$0xff]  ;;  %v284_v20 = vld [vmem:[%s949_s1 + $0x28] sm:$0xff]  ;;  %v283_v22 = vld [vmem:[%s949_s1 + $0x20] sm:$0xff] }
  0x1a   : > { %314 = vmatpush.msra.mxu0 %v291_v6  ;;  %v301_v19 = vld [vmem:[%s949_s1 + $0xb0] sm:$0xff]  ;;  %v300_v21 = vld [vmem:[%s949_s1 + $0xa8] sm:$0xff]  ;;  %v299_v23 = vld [vmem:[%s949_s1 + $0xa0] sm:$0xff]  ;;  %p648_p12 = pnand %p647_p11, %p773_p5  ;;  %p653_p2 = por %p652_p1, %p651_p0 }
  0x1b   : > { %334 = vmatpush.msra.mxu1 %v307_v7  ;;  %v282_v24 = vld [vmem:[%s949_s1 + $0x18] sm:$0xff]  ;;  %v281_v26 = vld [vmem:[%s949_s1 + $0x10] sm:$0xff]  ;;  %v280_v28 = vld [vmem:[%s949_s1 + $0x8] sm:$0xff] }
  0x1c   : > { %315 = vmatpush.msra.mxu0 %v290_v8  ;;  %v298_v25 = vld [vmem:[%s949_s1 + $0x98] sm:$0xff]  ;;  %v297_v27 = vld [vmem:[%s949_s1 + $0x90] sm:$0xff]  ;;  %v296_v29 = vld [vmem:[%s949_s1 + $0x88] sm:$0xff]  ;;  %p649_p13 = pneg %p648_p12 }
  0x1d   : > { %335 = vmatpush.msra.mxu1 %v306_v9  ;;  %v279_v30 = vld [vmem:[%s949_s1] sm:$0xff]  ;;  %v886_v33 = vld [vmem:[%s276_s21 + $0x8] sm:$0xff]  ;;  %v439_v46 = vld [vmem:[%s950_s2 + $0x10] sm:$0xff] }
  0x1e   : > { %316 = vmatpush.msra.mxu0 %v289_v10  ;;  %v295_v31 = vld [vmem:[%s949_s1 + $0x80] sm:$0xff]  ;;  %v440_v47 = vld [vmem:[%s950_s2 + $0x18] sm:$0xff]  ;;  %v438_v49 = vld [vmem:[%s950_s2 + $0x8] sm:$0xff]  ;;  %p654_p3 = pnand %p653_p2, %p649_p13 }
  0x1f   : > { %336 = vmatpush.msra.mxu1 %v305_v11  ;;  %v884_v32 = vld [vmem:[%s276_s21] sm:$0xff]  ;;  %s503_s21 = sshll.u32 %s271_s15, 4  ;;  %s504_s21 = int_to_ptr.vmem [resolvable:$true] %s503_s21 }
  0x20   : > { %317 = vmatpush.msra.mxu0 %v288_v12  ;;  %v352_v34 = vld [vmem:[%s952_s4] sm:$0x3] }
  0x21   : > { %337 = vmatpush.msra.mxu1 %v304_v13  ;;  %355 = vperm.xlu0 %625, %v352_v34   ;;  %v384_v36 = vld [vmem:[%s954_s6] sm:$0xff] }
  0x22   : > { %318 = vmatpush.msra.mxu0 %v287_v14  ;;  %v351_v40 = vld [vmem:[%s951_s3] sm:$0x3] }
  0x23   : > { %338 = vmatpush.msra.mxu1 %v303_v15  ;;  %v383_v45 = vld [vmem:[%s953_s5] sm:$0xff] }
  0x24   : > { %319 = vmatpush.msra.mxu0 %v286_v16  ;;  %v437_v48 = vld [vmem:[%s950_s2] sm:$0xff] }
  0x25   : > { %339 = vmatpush.msra.mxu1 %v302_v17 }
  0x26   : > { %320 = vmatpush.msra.mxu0 %v285_v18 }
  0x27   : > { %340 = vmatpush.msra.mxu1 %v301_v19 }
  0x28   : > { %321 = vmatpush.msra.mxu0 %v284_v20 }
  0x29   : > { %341 = vmatpush.msra.mxu1 %v300_v21  ;;  %387 = vperm.xlu0 %625, %v384_v36  }
  0x2a   : > { %322 = vmatpush.msra.mxu0 %v283_v22 }
  0x2b   : > { %342 = vmatpush.msra.mxu1 %v299_v23 }
  0x2c   : > { %323 = vmatpush.msra.mxu0 %v282_v24 }
  0x2d   : > { %343 = vmatpush.msra.mxu1 %v298_v25 }
  0x2e   : > { %324 = vmatpush.msra.mxu0 %v281_v26 }
  0x2f   : > { %344 = vmatpush.msra.mxu1 %v297_v27 }
  0x30   : > { %325 = vmatpush.msra.mxu0 %v280_v28 }
  0x31   : > { %345 = vmatpush.msra.mxu1 %v296_v29 }
  0x32   : > { %326 = vmatpush.msra.mxu0 %v279_v30 }
  0x33   : > { %346 = vmatpush.msra.mxu1 %v295_v31  ;;  %327 = vmatmul.f32.vlgmr.msra.gmra.mxu0 %v884_v32 }
  0x34   : > { %347 = vmatmul.f32.vlgmr.msra.gmra.mxu1 %v886_v33 }
  0x93   : > { %v356_v41 = vpop.permute.xlu0 %355 }
  0x9b   : > { %v388_v50 = vpop.permute.xlu0 %387 }
  0xb0   : > { %v328_v37 = vpop.f32.mrf.mxu0 }
  0xb1   : > { %v348_v38 = vpop.f32.mrf.mxu1 }
  0xb2   : > { %v349_v39 = vadd.f32 %v348_v38, %v328_v37 }
  0xb4   : > { %377 = vmatpush.msra.mxu2 %v349_v39 }
  0xb5   : > { %572 = vmatmul.msk.f32.vlgmr.msra.gmra.mxu2 %vm358_vm0, %v351_v40 }
  0xb6   : > { %459 = vmatpush.msrb.mxu2 %v439_v46 }
  0xb8   : > { %460 = vmatpush.msrb.mxu2 %v437_v48 }
 0x138   : > { %v379_v42 = vpop.f32.mrf.mxu2 }
 0x139   : > { %v380_v43 = vadd.f32 %v379_v42, %v356_v41 }
 0x13b   : > { %v382_v44 = vmax.f32 %v380_v43, 0.0 }
 0x13d   : > { %573 = vmatpush.msk.msra.mxu3 %vm394_vm1, %v382_v44 }
 0x13e   : > { %574 = vmatmul.msk.f32.vlgmr.msra.gmra.mxu3 %vm390_vm2, %v383_v45 }
 0x13f   : > { %479 = vmatpush.msrb.mxu3 %v440_v47 }
 0x141   : > { %480 = vmatpush.msrb.mxu3 %v438_v49 }
 0x1c1   : > { %v415_v51 = vpop.f32.mrf.mxu3 }
 0x1c2   : > { %v416_v52 = vadd.f32 %v415_v51, %v388_v50 }
 0x1c4   : > { %v575_v53 = vmul.f32 -1.442695, %v416_v52 }
 0x1c6   : > { %626 = vpow2.f32 %v575_v53 }
 0x1cc   : > { %v627_v54 = vpop.eup %626 }
 0x1cd   : > { %v421_v55 = vadd.f32 1.0, %v627_v54 }
 0x1cf   : > { %628 = vrcp.f32 %v421_v55  ;;  %v433_v59 = vand.u32 2147483648, %v421_v55  ;;  %v431_v61 = vand.u32 2147483647, %v421_v55  ;;  %vm427_vm4 = vweird.f32 %v421_v55 }
 0x1d1   : > { %v434_v63 = vor.u32 1.1754944e-38, %v433_v59  ;;  %vm432_vm7 = vcmp.eq.f32.partialorder %v431_v61, 8.507059e+37 }
 0x1d5   : > { %v629_v56 = vpop.eup %628 }
 0x1d6   : > { %v423_v57 = vmul.f32 %v629_v56, %v421_v55  ;;  %vm428_vm3 = vweird.f32 %v629_v56 }
 0x1d7   : > { %vm429_vm5 = vmor %vm427_vm4, %vm428_vm3 }
 0x1d8   : > { %v424_v58 = vsub.f32 1.0, %v423_v57 }
 0x1da   : > { %v425_v60 = vmul.f32 %v629_v56, %v424_v58 }
 0x1dc   : > { %v426_v62 = vadd.f32 %v629_v56, %v425_v60 }
 0x1de   : > { %v430_v0 = vsel %vm429_vm5, %v629_v56, %v426_v62 }
 0x1df   : > { %v435_v1 = vsel %vm432_vm7, %v434_v63, %v430_v0 }
 0x1e0   : > { %576 = vmatmul.msk.f32.vlgmr.msrb.gmra.mxu2 %vm441_vm6, %v435_v1  ;;  %577 = vmatmul.msk.f32.vlgmr.msrb.gmra.mxu3 %vm441_vm6, %v435_v1 }
 0x263   : > { %v462_v2 = vpop.f32.mrf.mxu2  ;;  %v482_v3 = vpop.f32.mrf.mxu3 }
 0x264   : > { %v485_v4 = vmul.f32 %v462_v2, %v884_v32  ;;  %v486_v5 = vmul.f32 %v482_v3, %v886_v33 }
 0x266   : > { %487 = vst [vmem:[%s271_s15] sm:$0xff] %v485_v4 }
 0x267   : > { %488 = vst [vmem:[%s271_s15 + $0x8] sm:$0xff] %v486_v5 }
 0x268   : > { %657 = shalt.err (!%p654_p3)
}
 0x269   : > { %585 = dma.vmem_to_hbm [thread:$0]  (%p773_p5), %s504_s21, 256, %s506_s22, %s490_s23  }
 0x26a PF: > { %p591_p4 = scmp.ge.s32.totalorder %s692_s27, 2  ;;  %s517_s14 = sand.u32 1, %s680_s24  }
 0x26b   : > { %s518_s18 = scalar_lea.sflag [#allocation3], %s517_s14 }
 0x26c   : > { %p588_p7 = pnand %p591_p4, %p777_p6 }
 0x26e   : > { %p589_p8 = pneg %p588_p7 }
 0x270   : > { %675 = dma.done.wait (%p589_p8), %s518_s18, 256  }
 0x271   : > { %677 = vsyncadd (%p589_p8), %s518_s18, 4294967040  ;;  %p17_p9 = scmp.ge.s32.totalorder %s760_s30, 4   ;;  %s958_s24 = smov %s684_s25 }
 0x272   : > { %s959_s25 = smov %s688_s26  ;;  %s960_s26 = smov %s771_s10 }
 0x273   : > { %s961_s27 = smov %s760_s30  ;;  %19 = sbr.rel (!%p17_p9) target bundleno = 3 (0x3), region = 83 }
 0x278   :  { %524 = vsyncpa [#allocation3], 1 }
 0x279   :  { %526 = vsyncpa [#allocation3 + $0x1], 1 }

</bundles_post_ra>
